<compile_context>
chip_gen: v7x
topology: tpu7x:2x2x1
jax: 0.10.0
libtpu: 0.0.40
codegen_flags: <defaults>
</compile_context>

<pallas_src>
import jax
import jax.numpy as jnp
from jax.experimental import pallas as pl
from jax.experimental.pallas import tpu as pltpu


def mlp_kernel(x_ref, w1_ref, b1_ref, w2_ref, b2_ref, o_ref):
    # fc1 on the MXU: (TB, D) @ (D, 64), f32 accumulation.
    h = jnp.dot(x_ref[...], w1_ref[...], preferred_element_type=jnp.float32)
    # bias + ReLU on the VPU.
    h = jnp.maximum(h + b1_ref[...], 0.0)
    # fc2 (64 -> 1): VPU multiply + lane (XLU) reduction; w2_ref is the (1, 64)
    # weight row, b2 is a scalar read from SMEM.
    y = jnp.sum(h * w2_ref[...], axis=-1, keepdims=True) + b2_ref[0, 0]
    # Sigmoid: exp on the EUP, approximate reciprocal also on the EUP.
    o_ref[...] = pl.reciprocal(1.0 + jnp.exp(-y), approx=True).astype(o_ref.dtype)


def simple_model_forward(x, w1, b1, w2, b2, *, block_b=512):
    """x: (B, D); w1: (D, H); b1: (1, H); w2: (H, 1); b2: (1, 1) -> (B, 1)."""
    B, D = x.shape
    H = w1.shape[1]
    O = w2.shape[1]
    assert O == 1 and w2.shape == (H, O) and b1.shape == (1, H)

    w2_row = w2.reshape(1, H)   # row layout for the in-kernel VPU broadcast
    b2_s = b2.reshape(1, 1)     # scalar, lives in SMEM

    # Batch tile: default 512 rows; clamp to B for tiny batches. Partial tiles
    # must respect the (8, 128) sublane rule unless they span the full axis.
    tb = B if B <= block_b else block_b
    if tb != B:
        tb = max(8, (tb // 8) * 8)
    grid = (pl.cdiv(B, tb),)

    return pl.pallas_call(
        mlp_kernel,
        out_shape=jax.ShapeDtypeStruct((B, O), jnp.float32),
        grid=grid,
        in_specs=[
            # Activations: tiled along batch, pipelined HBM->VMEM.
            pl.BlockSpec((tb, D), lambda i: (i, 0)),
            # Parameters: same block every step -> stay VMEM-resident.
            pl.BlockSpec((D, H), lambda i: (0, 0)),
            pl.BlockSpec((1, H), lambda i: (0, 0)),
            pl.BlockSpec((1, H), lambda i: (0, 0)),
            # b2 scalar via SMEM (no padded VMEM tile / vreg load).
            pl.BlockSpec(memory_space=pltpu.MemorySpace.SMEM),
        ],
        out_specs=pl.BlockSpec((tb, O), lambda i: (i, 0)),
        compiler_params=pltpu.CompilerParams(
            dimension_semantics=("parallel",),   # shard batch tiles across TCs (v7x)
        ),
    )(x, w1, b1, w2_row, b2_s)


if __name__ == "__main__":
    key = jax.random.PRNGKey(0)
    k_x, k_w1, k_b1, k_w2, k_b2 = jax.random.split(key, 5)

    batch = 256        # small demo batch; block_b=128 below gives a 2-step grid
    input_size = 32
    hidden = 64
    out_dim = 1

    # Deterministic synthetic parameters (PyTorch-style uniform init bounds).
    bound1 = 1.0 / jnp.sqrt(input_size)
    bound2 = 1.0 / jnp.sqrt(hidden)
    x = jax.random.normal(k_x, (batch, input_size), dtype=jnp.float32)
    w1 = jax.random.uniform(k_w1, (input_size, hidden), jnp.float32, -bound1, bound1)
    b1 = jax.random.uniform(k_b1, (1, hidden), jnp.float32, -bound1, bound1)
    w2 = jax.random.uniform(k_w2, (hidden, out_dim), jnp.float32, -bound2, bound2)
    b2 = jax.random.uniform(k_b2, (1, out_dim), jnp.float32, -bound2, bound2)

    # block_b=128 exercises a multi-step (pipelined, parallel) grid at a small
    # demo batch; production default is 512.
    y = simple_model_forward(x, w1, b1, w2, b2, block_b=128)
    jax.block_until_ready(y)

    # Pure-JAX reference check (tolerance widened slightly for the EUP
    # approximate reciprocal in the sigmoid).
    h_ref = jnp.maximum(x @ w1 + b1, 0.0)
    y_ref = jax.nn.sigmoid(h_ref @ w2 + b2)
    assert y.shape == (batch, out_dim)
    assert jnp.allclose(y, y_ref, atol=2e-3, rtol=2e-3), float(
        jnp.max(jnp.abs(y - y_ref))
    )

    print("KERNEL_OK")
</pallas_src>

<mosaic_0001>
module attributes {stable_mosaic.version = 11 : i64} {
  func.func @mlp_kernel(%arg0: i32, %arg1: memref<128x32xf32, #tpu.memory_space<vmem>>, %arg2: memref<32x64xf32, #tpu.memory_space<vmem>>, %arg3: memref<1x64xf32, #tpu.memory_space<vmem>>, %arg4: memref<1x64xf32, #tpu.memory_space<vmem>>, %arg5: memref<1x1xf32, #tpu.memory_space<smem>>, %arg6: memref<128x1xf32, #tpu.memory_space<vmem>>) attributes {dimension_semantics = [#tpu.dimension_semantics<parallel>], iteration_bounds = array<i64: 2>, scalar_prefetch = 0 : i64, scratch_operands = 0 : i64, tpu.core_type = #tpu.core_type<tc>, window_params = [{transform_indices = @transform_0, window_bounds = array<i64: 128, 32>}, {pipeline_mode = #tpu.pipeline_mode<synchronous>, transform_indices = @transform_1, window_bounds = array<i64: 32, 64>}, {pipeline_mode = #tpu.pipeline_mode<synchronous>, transform_indices = @transform_2, window_bounds = array<i64: 1, 64>}, {pipeline_mode = #tpu.pipeline_mode<synchronous>, transform_indices = @transform_3, window_bounds = array<i64: 1, 64>}, {transform_indices = @transform_4, window_bounds = array<i64: 1, 1>}, {transform_indices = @transform_5, window_bounds = array<i64: 128, 1>}]} {
    %c0 = arith.constant 0 : index
    %c0_0 = arith.constant 0 : index
    %0 = vector.load %arg1[%c0, %c0_0] : memref<128x32xf32, #tpu.memory_space<vmem>>, vector<128x32xf32>
    %c0_1 = arith.constant 0 : index
    %c0_2 = arith.constant 0 : index
    %1 = vector.load %arg2[%c0_1, %c0_2] : memref<32x64xf32, #tpu.memory_space<vmem>>, vector<32x64xf32>
    %cst = arith.constant dense<0.000000e+00> : vector<128x64xf32>
    %2 = tpu.matmul %0, %1, %cst {dimension_numbers = #tpu.dot_dimension_numbers<[1], [0], [0], [1], [0, 0, 1, 1], [], []>} : vector<128x32xf32>, vector<32x64xf32>, vector<128x64xf32> -> vector<128x64xf32>
    %c0_3 = arith.constant 0 : index
    %c0_4 = arith.constant 0 : index
    %3 = vector.load %arg3[%c0_3, %c0_4] : memref<1x64xf32, #tpu.memory_space<vmem>>, vector<1x64xf32>
    %4 = vector.broadcast %3 : vector<1x64xf32> to vector<128x64xf32>
    %5 = arith.addf %2, %4 : vector<128x64xf32>
    %cst_5 = arith.constant 0.000000e+00 : f32
    %6 = vector.broadcast %cst_5 : f32 to vector<128x64xf32>
    %7 = arith.maximumf %5, %6 : vector<128x64xf32>
    %c0_6 = arith.constant 0 : index
    %c0_7 = arith.constant 0 : index
    %8 = vector.load %arg4[%c0_6, %c0_7] : memref<1x64xf32, #tpu.memory_space<vmem>>, vector<1x64xf32>
    %9 = vector.broadcast %8 : vector<1x64xf32> to vector<128x64xf32>
    %10 = arith.mulf %7, %9 : vector<128x64xf32>
    %cst_8 = arith.constant dense<0.000000e+00> : vector<128xf32>
    %11 = vector.multi_reduction <add>, %10, %cst_8 [1] : vector<128x64xf32> to vector<128xf32>
    %12 = vector.shape_cast %11 : vector<128xf32> to vector<128x1xf32>
    %c0_9 = arith.constant 0 : index
    %c0_10 = arith.constant 0 : index
    %13 = memref.load %arg5[%c0_9, %c0_10] : memref<1x1xf32, #tpu.memory_space<smem>>
    %14 = vector.broadcast %13 : f32 to vector<128x1xf32>
    %15 = arith.addf %12, %14 : vector<128x1xf32>
    %cst_11 = arith.constant 0.000000e+00 : f32
    %16 = vector.broadcast %cst_11 : f32 to vector<128x1xf32>
    %17 = arith.subf %16, %15 : vector<128x1xf32>
    %18 = math.exp %17 : vector<128x1xf32>
    %cst_12 = arith.constant 1.000000e+00 : f32
    %19 = vector.broadcast %cst_12 : f32 to vector<128x1xf32>
    %20 = arith.addf %19, %18 : vector<128x1xf32>
    %21 = tpu.reciprocal %20 {approx = true} : vector<128x1xf32> -> vector<128x1xf32>
    %c0_13 = arith.constant 0 : index
    %c0_14 = arith.constant 0 : index
    %22 = vector.load %arg6[%c0_13, %c0_14] : memref<128x1xf32, #tpu.memory_space<vmem>>, vector<128x1xf32>
    tpu.vector_store %arg6[%c0_13, %c0_14], %21 {strides = array<i32>} : memref<128x1xf32, #tpu.memory_space<vmem>>, vector<128x1xf32>,
    return
  }
  func.func @transform_0(%arg0: i32) -> (i32, i32) {
    %c0_i32 = arith.constant 0 : i32
    %c0_i32_0 = arith.constant 0 : i32
    return %arg0, %c0_i32 : i32, i32
  }
  func.func @transform_1(%arg0: i32) -> (i32, i32) {
    %c0_i32 = arith.constant 0 : i32
    %c0_i32_0 = arith.constant 0 : i32
    %c0_i32_1 = arith.constant 0 : i32
    return %c0_i32, %c0_i32_0 : i32, i32
  }
  func.func @transform_2(%arg0: i32) -> (i32, i32) {
    %c0_i32 = arith.constant 0 : i32
    %c0_i32_0 = arith.constant 0 : i32
    %c0_i32_1 = arith.constant 0 : i32
    return %c0_i32, %c0_i32_0 : i32, i32
  }
  func.func @transform_3(%arg0: i32) -> (i32, i32) {
    %c0_i32 = arith.constant 0 : i32
    %c0_i32_0 = arith.constant 0 : i32
    %c0_i32_1 = arith.constant 0 : i32
    return %c0_i32, %c0_i32_0 : i32, i32
  }
  func.func @transform_4(%arg0: i32) -> (i32, i32) {
    %c0_i32 = arith.constant 0 : i32
    %c0_i32_0 = arith.constant 0 : i32
    %c0_i32_1 = arith.constant 0 : i32
    return %c0_i32, %c0_i32_0 : i32, i32
  }
  func.func @transform_5(%arg0: i32) -> (i32, i32) {
    %c0_i32 = arith.constant 0 : i32
    %c0_i32_0 = arith.constant 0 : i32
    return %arg0, %c0_i32 : i32, i32
  }
}

</mosaic_0001>

<bundles_post_ra>
// kernel: tpu_custom_call.1
= control target key start
LH: loop header
LB: loop body
LE: loop exit
PB: predicated region body
PF: predicated region fallthrough
CT: control target
= control target key end

     0   :  { %s915_s20 = smov 0   ;;  %s1095_s0 = inlined_call_operand.vmem [shape: f32[256,32], index: 0, kind: input, shape index: {}]   ;;  %s1096_s1 = inlined_call_operand.vmem [shape: f32[32,64], index: 1, kind: input, shape index: {}]   ;;  %s1097_s2 = inlined_call_operand.vmem [shape: f32[1,64], index: 2, kind: input, shape index: {}]   ;;  %s1098_s3 = inlined_call_operand.vmem [shape: f32[1,64], index: 3, kind: input, shape index: {}]   ;;  %s1099_s4 = inlined_call_operand.<no memory space> [shape: f32[1,1], index: 4, kind: input, shape index: {}]   ;;  %s1100_s5 = inlined_call_operand.vmem [shape: f32[256,1], index: 5, kind: output, shape index: {}]  }
   0x1   :  { %10 = sst [smem:[#allocation2]] %s1099_s4 }
   0x2 LB: > { %s709_s21 = sadd.s32 4294967295, %s880_s20   ;;  %p713_p0 = scmp.ge.s32.totalorder %s880_s20, 1  ;;  %s880_s20 = sphi %s915_s20, %s16_s20  }
   0x3   : > { %p189_p1 = scmp.lt.s32.totalorder %s880_s20, 3 }
   0x5   : > { %p190_p2 = pnand %p713_p0, %p189_p1 }
   0x6   : > { %v245_v0 = vld [vmem:[%s1096_s1] sm:$0xff] (!%p190_p2)  ;;  %v246_v1 = vld [vmem:[%s1096_s1 + $0x8] sm:$0xff] (!%p190_p2)  ;;  %v247_v2 = vld [vmem:[%s1096_s1 + $0x10] sm:$0xff] (!%p190_p2)  ;;  %s714_s27 = sshll.u32 (!%p190_p2), %s709_s21, 4  ;;  %vm256_vm0 = vcmask (!%p190_p2), 261120   ;;  %vm489_vm1 = vcmask (!%p190_p2), 523264  }
   0x7   : > { %193 = sbr.rel (%p190_p2) target bundleno = 443 (0x1bb), region = 40  ;;  %v790_v3 = vpack.c.bf16 (!%p190_p2), %v246_v1, %v245_v0  ;;  %v248_v4 = vld [vmem:[%s1096_s1 + $0x18] sm:$0xff] (!%p190_p2)  ;;  %p218_p3 = scmp.lt.s32.totalorder (!%p190_p2), %s714_s27, 31  ;;  %v980_v22 = vld [vmem:[%s1097_s2] ss:$0 sm:$0xff] (!%p190_p2)  ;;  %vm636_vm2 = vcmask (!%p190_p2), 7168  }
   0x8   : > { %v794_v5 = vpack.c.bf16 (!%p190_p2), %v248_v4, %v247_v2  ;;  %v989_v31 = vld [vmem:[%s1098_s3] ss:$0 sm:$0xff] (!%p190_p2)  ;;  %s538_s13 = sld [smem:[#allocation2]] (!%p190_p2) }
   0x9   : > { %791 = vmatprep.subr.bf16.mxu0 (!%p190_p2), %v790_v3  ;;  %798 = vmatprep.subr.bf16.mxu1 (!%p190_p2), %v790_v3 }
   0xa   : > { %793 = vmatpush3.bf16.msra.mxu0 (!%p190_p2), %v790_v3  ;;  %800 = vmatpush3.bf16.msra.mxu1 (!%p190_p2), %v790_v3 }
   0xb   : > { %795 = vmatprep.subr.bf16.mxu0 (!%p190_p2), %v794_v5  ;;  %799 = vmatprep.subr.bf16.mxu1 (!%p190_p2), %v794_v5 }
   0xe   : > { %s1102_s27 = smov (!%p218_p3, %s714_s27), 31  ;;  %797 = vmatpush3.bf16.msra.mxu0 %v794_v5  ;;  %801 = vmatpush3.bf16.msra.mxu1 %v794_v5 }
   0xf   : > { %s715_s30 = sshll.u32 %s1102_s27, 3 }
  0x10   : > { %s943_s8 = scalar_lea.vmem %s1095_s0, %s715_s30  ;;  %s1056_s16 = scalar_lea.vmem %s1100_s5, %s715_s30 }
  0x11   : > { %v229_v6 = vld [vmem:[%s943_s8] sm:$0xff]  ;;  %v230_v8 = vld [vmem:[%s943_s8 + $0x8] sm:$0xff]  ;;  %v231_v10 = vld [vmem:[%s943_s8 + $0x10] sm:$0xff] }
  0x12   : > { %v237_v7 = vld [vmem:[%s943_s8 + $0x40] sm:$0xff]  ;;  %v238_v9 = vld [vmem:[%s943_s8 + $0x48] sm:$0xff]  ;;  %766 = vmatprep.mubr.msk.f32.mxu0 %vm256_vm0, %v229_v6  ;;  %v239_v11 = vld [vmem:[%s943_s8 + $0x50] sm:$0xff] }
  0x13   : > { %778 = vmatprep.mubr.msk.f32.mxu1 %vm256_vm0, %v237_v7  ;;  %767 = vmatmul.mubr.msk.f32.vlgmr.msra.gmra.mrb[0].mxu0 %vm256_vm0, %v230_v8  ;;  %v232_v12 = vld [vmem:[%s943_s8 + $0x18] sm:$0xff]  ;;  %v233_v14 = vld [vmem:[%s943_s8 + $0x20] sm:$0xff]  ;;  %v234_v16 = vld [vmem:[%s943_s8 + $0x28] sm:$0xff] }
  0x14   : > { %779 = vmatmul.mubr.msk.f32.vlgmr.msra.gmra.mrb[0].mxu1 %vm256_vm0, %v238_v9  ;;  %769 = vmatprep.mubr.msk.f32.mxu0 %vm256_vm0, %v231_v10  ;;  %v240_v13 = vld [vmem:[%s943_s8 + $0x58] sm:$0xff]  ;;  %v241_v15 = vld [vmem:[%s943_s8 + $0x60] sm:$0xff]  ;;  %v242_v17 = vld [vmem:[%s943_s8 + $0x68] sm:$0xff] }
  0x15   : > { %781 = vmatprep.mubr.msk.f32.mxu1 %vm256_vm0, %v239_v11  ;;  %v235_v18 = vld [vmem:[%s943_s8 + $0x30] sm:$0xff]  ;;  %v236_v20 = vld [vmem:[%s943_s8 + $0x38] sm:$0xff] }
  0x16   : > { %v243_v19 = vld [vmem:[%s943_s8 + $0x70] sm:$0xff]  ;;  %v244_v21 = vld [vmem:[%s943_s8 + $0x78] sm:$0xff] }
  0x17   : > { %770 = vmatmul.mubr.msk.f32.gmra.mrb[2].mxu0 %vm256_vm0, %v232_v12 }
  0x18   : > { %782 = vmatmul.mubr.msk.f32.gmra.mrb[2].mxu1 %vm256_vm0, %v240_v13  ;;  %772 = vmatprep.mubr.msk.f32.mxu0 %vm256_vm0, %v233_v14 }
  0x19   : > { %784 = vmatprep.mubr.msk.f32.mxu1 %vm256_vm0, %v241_v15 }
  0x1b   : > { %773 = vmatmul.mubr.msk.f32.gmra.mrb[4].mxu0 %vm256_vm0, %v234_v16 }
  0x1c   : > { %785 = vmatmul.mubr.msk.f32.gmra.mrb[4].mxu1 %vm256_vm0, %v242_v17  ;;  %775 = vmatprep.mubr.msk.f32.mxu0 %vm256_vm0, %v235_v18 }
  0x1d   : > { %787 = vmatprep.mubr.msk.f32.mxu1 %vm256_vm0, %v243_v19 }
  0x1f   : > { %776 = vmatmul.mubr.msk.f32.gmra.mrb[6].mxu0 %vm256_vm0, %v236_v20 }
  0x20   : > { %788 = vmatmul.mubr.msk.f32.gmra.mrb[6].mxu1 %vm256_vm0, %v244_v21 }
  0xe6   : > { %v768_v23 = vpop.f32.mrb[0].mxu0 }
  0xe7   : > { %v780_v24 = vpop.f32.mrb[0].mxu1  ;;  %v377_v25 = vadd.f32 %v768_v23, %v980_v22  ;;  %v371_v27 = vpop.f32.mrb[1].mxu0 }
  0xe8   : > { %v417_v26 = vadd.f32 %v780_v24, %v980_v22  ;;  %v411_v28 = vpop.f32.mrb[1].mxu1  ;;  %v372_v29 = vadd.f32 %v980_v22, %v371_v27 }
  0xe9   : > { %v412_v30 = vadd.f32 %v980_v22, %v411_v28  ;;  %v451_v32 = vmax.f32 %v377_v25, 0.0 }
  0xea   : > { %v459_v33 = vmax.f32 %v417_v26, 0.0  ;;  %v450_v34 = vmax.f32 %v372_v29, 0.0  ;;  %v771_v35 = vpop.f32.mrb[2].mxu0 }
  0xeb   : > { %v783_v36 = vpop.f32.mrb[2].mxu1  ;;  %v387_v37 = vadd.f32 %v771_v35, %v980_v22  ;;  %v381_v38 = vpop.f32.mrb[3].mxu0  ;;  %v474_v42 = vmul.f32 %v989_v31, %v451_v32  ;;  %v458_v43 = vmax.f32 %v412_v30, 0.0 }
  0xec   : > { %v427_v39 = vadd.f32 %v783_v36, %v980_v22  ;;  %v482_v40 = vmul.f32 %v989_v31, %v459_v33  ;;  %v421_v41 = vpop.f32.mrb[3].mxu1  ;;  %v382_v44 = vadd.f32 %v980_v22, %v381_v38  ;;  %v473_v46 = vmul.f32 %v989_v31, %v450_v34 }
  0xed   : > { %v422_v45 = vadd.f32 %v980_v22, %v421_v41  ;;  %v453_v47 = vmax.f32 %v387_v37, 0.0  ;;  %v493_v50 = vsel %vm489_vm1, %v474_v42, 0.0  ;;  %v481_v59 = vmul.f32 %v989_v31, %v458_v43 }
  0xee   : > { %v461_v48 = vmax.f32 %v427_v39, 0.0  ;;  %v517_v49 = vsel %vm489_vm1, %v482_v40, 0.0  ;;  %494 = vadd.xlane.f32.xlu0 %v493_v50  ;;  %v774_v51 = vpop.f32.mrb[4].mxu0  ;;  %v452_v60 = vmax.f32 %v382_v44, 0.0  ;;  %v490_v63 = vsel %vm489_vm1, %v473_v46, 0.0 }
  0xef   : > { %518 = vadd.xlane.f32.xlu1 %v517_v49  ;;  %v786_v52 = vpop.f32.mrb[4].mxu1  ;;  %v476_v53 = vmul.f32 %v989_v31, %v453_v47  ;;  %v397_v54 = vadd.f32 %v774_v51, %v980_v22  ;;  %v391_v55 = vpop.f32.mrb[5].mxu0  ;;  %v460_v61 = vmax.f32 %v422_v45, 0.0  ;;  %v514_v9 = vsel %vm489_vm1, %v481_v59, 0.0 }
  0xf0   : > { %v484_v56 = vmul.f32 %v989_v31, %v461_v48  ;;  %v431_v57 = vpop.f32.mrb[5].mxu1  ;;  %v392_v58 = vadd.f32 %v980_v22, %v391_v55  ;;  %v437_v0 = vadd.f32 %v786_v52, %v980_v22  ;;  %v475_v10 = vmul.f32 %v989_v31, %v452_v60 }
  0xf1   : > { %v499_v62 = vsel %vm489_vm1, %v476_v53, 0.0  ;;  %v432_v1 = vadd.f32 %v980_v22, %v431_v57  ;;  %v455_v4 = vmax.f32 %v397_v54, 0.0  ;;  %v483_v11 = vmul.f32 %v989_v31, %v460_v61 }
  0xf2   : > { %491 = vadd.xlane.f32.xlu0 %v490_v63  ;;  %v777_v2 = vpop.f32.mrb[6].mxu0  ;;  %v454_v5 = vmax.f32 %v392_v58, 0.0  ;;  %v523_v6 = vsel %vm489_vm1, %v484_v56, 0.0  ;;  %v463_v12 = vmax.f32 %v437_v0, 0.0  ;;  %v496_v18 = vsel %vm489_vm1, %v475_v10, 0.0 }
  0xf3   : > { %500 = vadd.xlane.f32.xlu1 %v499_v62  ;;  %v789_v3 = vpop.f32.mrb[6].mxu1  ;;  %v401_v7 = vpop.f32.mrb[7].mxu0  ;;  %v462_v13 = vmax.f32 %v432_v1, 0.0  ;;  %v407_v14 = vadd.f32 %v777_v2, %v980_v22  ;;  %v478_v16 = vmul.f32 %v989_v31, %v455_v4  ;;  %v520_v19 = vsel %vm489_vm1, %v483_v11, 0.0 }
  0xf4   : > { %v441_v8 = vpop.f32.mrb[7].mxu1  ;;  %v402_v15 = vadd.f32 %v980_v22, %v401_v7  ;;  %v477_v17 = vmul.f32 %v989_v31, %v454_v5  ;;  %v447_v20 = vadd.f32 %v789_v3, %v980_v22  ;;  %v486_v23 = vmul.f32 %v989_v31, %v463_v12 }
  0xf5   : > { %v442_v21 = vadd.f32 %v980_v22, %v441_v8  ;;  %v485_v24 = vmul.f32 %v989_v31, %v462_v13  ;;  %v457_v25 = vmax.f32 %v407_v14, 0.0  ;;  %v505_v27 = vsel %vm489_vm1, %v478_v16, 0.0 }
  0xf6   : > { %515 = vadd.xlane.f32.xlu0 %v514_v9  ;;  %v456_v26 = vmax.f32 %v402_v15, 0.0  ;;  %v502_v28 = vsel %vm489_vm1, %v477_v17, 0.0  ;;  %v465_v29 = vmax.f32 %v447_v20, 0.0  ;;  %v529_v30 = vsel %vm489_vm1, %v486_v23, 0.0 }
  0xf7   : > { %524 = vadd.xlane.f32.xlu1 %v523_v6  ;;  %v464_v32 = vmax.f32 %v442_v21, 0.0  ;;  %v526_v33 = vsel %vm489_vm1, %v485_v24, 0.0  ;;  %v480_v22 = vmul.f32 %v989_v31, %v457_v25  ;;  %v1035_v41 = vstv %s538_s13 }
  0xf8   : > { %v479_v34 = vmul.f32 %v989_v31, %v456_v26  ;;  %v488_v37 = vmul.f32 %v989_v31, %v465_v29 }
  0xf9   : > { %v511_v35 = vsel %vm489_vm1, %v480_v22, 0.0  ;;  %v487_v38 = vmul.f32 %v989_v31, %v464_v32 }
  0xfa   : > { %521 = vadd.xlane.f32.xlu0 %v520_v19  ;;  %v508_v36 = vsel %vm489_vm1, %v479_v34, 0.0  ;;  %v535_v39 = vsel %vm489_vm1, %v488_v37, 0.0 }
  0xfb   : > { %497 = vadd.xlane.f32.xlu1 %v496_v18  ;;  %v532_v40 = vsel %vm489_vm1, %v487_v38, 0.0 }
  0xfe   : > { %503 = vadd.xlane.f32.xlu0 %v502_v28 }
  0xff   : > { %506 = vadd.xlane.f32.xlu1 %v505_v27 }
 0x102   : > { %527 = vadd.xlane.f32.xlu0 %v526_v33 }
 0x103   : > { %530 = vadd.xlane.f32.xlu1 %v529_v30 }
 0x106   : > { %509 = vadd.xlane.f32.xlu0 %v508_v36 }
 0x107   : > { %512 = vadd.xlane.f32.xlu1 %v511_v35 }
 0x10a   : > { %533 = vadd.xlane.f32.xlu0 %v532_v40 }
 0x10b   : > { %536 = vadd.xlane.f32.xlu1 %v535_v39 }
 0x17b   : > { %v495_v43 = vpop.xlane.xlu0 %494 }
 0x17c   : > { %v519_v42 = vpop.xlane.xlu1 %518  ;;  %v541_v45 = vadd.f32 %v1035_v41, %v495_v43 }
 0x17d   : > { %v549_v44 = vadd.f32 %v1035_v41, %v519_v42 }
 0x17e   : > { %v557_v47 = vsub.f32 0.0, %v541_v45 }
 0x17f   : > { %v565_v46 = vsub.f32 0.0, %v549_v44  ;;  %v492_v48 = vpop.xlane.xlu0 %491 }
 0x180   : > { %v501_v31 = vpop.xlane.xlu1 %500  ;;  %v574_v50 = vmul.f32 1.442695, %v557_v47  ;;  %v540_v52 = vadd.f32 %v1035_v41, %v492_v48 }
 0x181   : > { %v590_v49 = vmul.f32 1.442695, %v565_v46  ;;  %v543_v51 = vadd.f32 %v1035_v41, %v501_v31 }
 0x182   : > { %v556_v54 = vsub.f32 0.0, %v540_v52 }
 0x183   : > { %810 = vpow2.f32 %v590_v49  ;;  %v559_v53 = vsub.f32 0.0, %v543_v51  ;;  %v516_v56 = vpop.xlane.xlu0 %515 }
 0x184   : > { %812 = vpow2.f32 %v574_v50  ;;  %v525_v55 = vpop.xlane.xlu1 %524  ;;  %v572_v58 = vmul.f32 1.442695, %v556_v54  ;;  %v548_v60 = vadd.f32 %v1035_v41, %v516_v56 }
 0x185   : > { %v578_v57 = vmul.f32 1.442695, %v559_v53  ;;  %v551_v59 = vadd.f32 %v1035_v41, %v525_v55 }
 0x186   : > { %v564_v62 = vsub.f32 0.0, %v548_v60 }
 0x187   : > { %814 = vpow2.f32 %v578_v57  ;;  %v567_v61 = vsub.f32 0.0, %v551_v59  ;;  %v522_v0 = vpop.xlane.xlu0 %521 }
 0x188   : > { %816 = vpow2.f32 %v572_v58  ;;  %v498_v63 = vpop.xlane.xlu1 %497  ;;  %v588_v2 = vmul.f32 1.442695, %v564_v62  ;;  %v550_v4 = vadd.f32 %v1035_v41, %v522_v0 }
 0x189   : > { %v594_v1 = vmul.f32 1.442695, %v567_v61  ;;  %v542_v3 = vadd.f32 %v1035_v41, %v498_v63 }
 0x18a   : > { %v566_v6 = vsub.f32 0.0, %v550_v4 }
 0x18b   : > { %818 = vpow2.f32 %v594_v1  ;;  %v558_v5 = vsub.f32 0.0, %v542_v3  ;;  %v504_v8 = vpop.xlane.xlu0 %503 }
 0x18c   : > { %820 = vpow2.f32 %v588_v2  ;;  %v507_v7 = vpop.xlane.xlu1 %506  ;;  %v544_v12 = vadd.f32 %v1035_v41, %v504_v8  ;;  %v592_v15 = vmul.f32 1.442695, %v566_v6 }
 0x18d   : > { %v811_v9 = vpop.eup %810  ;;  %v576_v10 = vmul.f32 1.442695, %v558_v5  ;;  %v545_v11 = vadd.f32 %v1035_v41, %v507_v7 }
 0x18e   : > { %v813_v13 = vpop.eup %812  ;;  %v613_v14 = vadd.f32 1.0, %v811_v9  ;;  %v560_v18 = vsub.f32 0.0, %v544_v12 }
 0x18f   : > { %v605_v16 = vadd.f32 1.0, %v813_v13  ;;  %822 = vpow2.f32 %v576_v10  ;;  %v561_v17 = vsub.f32 0.0, %v545_v11  ;;  %v528_v20 = vpop.xlane.xlu0 %527 }
 0x190   : > { %824 = vrcp.f32 %v613_v14  ;;  %v531_v19 = vpop.xlane.xlu1 %530  ;;  %v580_v27 = vmul.f32 1.442695, %v560_v18  ;;  %v552_v28 = vadd.f32 %v1035_v41, %v528_v20 }
 0x191   : > { %v815_v21 = vpop.eup %814  ;;  %826 = vrcp.f32 %v605_v16  ;;  %v582_v23 = vmul.f32 1.442695, %v561_v17  ;;  %v553_v24 = vadd.f32 %v1035_v41, %v531_v19 }
 0x192   : > { %v817_v25 = vpop.eup %816  ;;  %v607_v26 = vadd.f32 1.0, %v815_v21  ;;  %828 = vpow2.f32 %v592_v15  ;;  %v568_v32 = vsub.f32 0.0, %v552_v28 }
 0x193   : > { %v604_v29 = vadd.f32 1.0, %v817_v25  ;;  %830 = vpow2.f32 %v582_v23  ;;  %v569_v30 = vsub.f32 0.0, %v553_v24  ;;  %v510_v22 = vpop.xlane.xlu0 %509 }
 0x194   : > { %832 = vrcp.f32 %v607_v26  ;;  %v513_v33 = vpop.xlane.xlu1 %512  ;;  %v546_v37 = vadd.f32 %v1035_v41, %v510_v22  ;;  %v596_v40 = vmul.f32 1.442695, %v568_v32 }
 0x195   : > { %v819_v34 = vpop.eup %818  ;;  %834 = vrcp.f32 %v604_v29  ;;  %v598_v35 = vmul.f32 1.442695, %v569_v30  ;;  %v547_v36 = vadd.f32 %v1035_v41, %v513_v33 }
 0x196   : > { %v821_v38 = vpop.eup %820  ;;  %v615_v39 = vadd.f32 1.0, %v819_v34  ;;  %836 = vpow2.f32 %v580_v27  ;;  %v562_v44 = vsub.f32 0.0, %v546_v37 }
 0x197   : > { %v612_v42 = vadd.f32 1.0, %v821_v38  ;;  %838 = vpow2.f32 %v598_v35  ;;  %v563_v43 = vsub.f32 0.0, %v547_v36  ;;  %v534_v46 = vpop.xlane.xlu0 %533 }
 0x198   : > { %840 = vrcp.f32 %v615_v39  ;;  %v537_v45 = vpop.xlane.xlu1 %536  ;;  %v584_v48 = vmul.f32 1.442695, %v562_v44  ;;  %v554_v52 = vadd.f32 %v1035_v41, %v534_v46 }
 0x199   : > { %v823_v47 = vpop.eup %822  ;;  %842 = vrcp.f32 %v612_v42  ;;  %v586_v31 = vmul.f32 1.442695, %v563_v43  ;;  %v555_v49 = vadd.f32 %v1035_v41, %v537_v45 }
 0x19a   : > { %v825_v50 = vpop.eup %824  ;;  %v606_v51 = vadd.f32 1.0, %v823_v47  ;;  %844 = vpow2.f32 %v596_v40  ;;  %v570_v56 = vsub.f32 0.0, %v554_v52 }
 0x19b   : > { %v827_v53 = vpop.eup %826  ;;  %646 = vst.msk [vmem:[%s1056_s16 + $0x48] sm:$0xff] %vm636_vm2, %v825_v50  ;;  %846 = vpow2.f32 %v586_v31  ;;  %v571_v54 = vsub.f32 0.0, %v555_v49 }
 0x19c   : > { %v829_v55 = vpop.eup %828  ;;  %638 = vst.msk [vmem:[%s1056_s16 + $0x8] sm:$0xff] %vm636_vm2, %v827_v53  ;;  %848 = vrcp.f32 %v606_v51  ;;  %v600_v41 = vmul.f32 1.442695, %v570_v56 }
 0x19d   : > { %v831_v57 = vpop.eup %830  ;;  %v614_v58 = vadd.f32 1.0, %v829_v55  ;;  %850 = vpow2.f32 %v584_v48  ;;  %v602_v59 = vmul.f32 1.442695, %v571_v54 }
 0x19e   : > { %v833_v60 = vpop.eup %832  ;;  %v609_v61 = vadd.f32 1.0, %v831_v57 }
 0x19f   : > { %v835_v62 = vpop.eup %834  ;;  %640 = vst.msk [vmem:[%s1056_s16 + $0x18] sm:$0xff] %vm636_vm2, %v833_v60  ;;  %852 = vrcp.f32 %v614_v58 }
 0x1a0   : > { %v837_v63 = vpop.eup %836  ;;  %637 = vst.msk [vmem:[%s1056_s16] sm:$0xff] %vm636_vm2, %v835_v62  ;;  %854 = vrcp.f32 %v609_v61 }
 0x1a1   : > { %v839_v0 = vpop.eup %838  ;;  %v608_v1 = vadd.f32 1.0, %v837_v63  ;;  %856 = vpow2.f32 %v602_v59 }
 0x1a2   : > { %v841_v2 = vpop.eup %840  ;;  %v617_v3 = vadd.f32 1.0, %v839_v0  ;;  %858 = vpow2.f32 %v600_v41 }
 0x1a3   : > { %v843_v4 = vpop.eup %842  ;;  %648 = vst.msk [vmem:[%s1056_s16 + $0x58] sm:$0xff] %vm636_vm2, %v841_v2  ;;  %860 = vrcp.f32 %v608_v1 }
 0x1a4   : > { %v845_v5 = vpop.eup %844  ;;  %645 = vst.msk [vmem:[%s1056_s16 + $0x40] sm:$0xff] %vm636_vm2, %v843_v4  ;;  %862 = vrcp.f32 %v617_v3 }
 0x1a5   : > { %v847_v6 = vpop.eup %846  ;;  %v616_v7 = vadd.f32 1.0, %v845_v5 }
 0x1a6   : > { %v849_v8 = vpop.eup %848  ;;  %v611_v9 = vadd.f32 1.0, %v847_v6 }
 0x1a7   : > { %v851_v10 = vpop.eup %850  ;;  %639 = vst.msk [vmem:[%s1056_s16 + $0x10] sm:$0xff] %vm636_vm2, %v849_v8  ;;  %864 = vrcp.f32 %v616_v7 }
 0x1a8   : > { %866 = vrcp.f32 %v611_v9  ;;  %v610_v11 = vadd.f32 1.0, %v851_v10 }
 0x1a9   : > { %v853_v12 = vpop.eup %852 }
 0x1aa   : > { %v855_v13 = vpop.eup %854  ;;  %647 = vst.msk [vmem:[%s1056_s16 + $0x50] sm:$0xff] %vm636_vm2, %v853_v12  ;;  %868 = vrcp.f32 %v610_v11 }
 0x1ab   : > { %v857_v14 = vpop.eup %856  ;;  %642 = vst.msk [vmem:[%s1056_s16 + $0x28] sm:$0xff] %vm636_vm2, %v855_v13 }
 0x1ac   : > { %v859_v15 = vpop.eup %858  ;;  %v619_v16 = vadd.f32 1.0, %v857_v14 }
 0x1ad   : > { %v861_v17 = vpop.eup %860  ;;  %v618_v18 = vadd.f32 1.0, %v859_v15 }
 0x1ae   : > { %v863_v19 = vpop.eup %862  ;;  %641 = vst.msk [vmem:[%s1056_s16 + $0x20] sm:$0xff] %vm636_vm2, %v861_v17  ;;  %870 = vrcp.f32 %v619_v16 }
 0x1af   : > { %650 = vst.msk [vmem:[%s1056_s16 + $0x68] sm:$0xff] %vm636_vm2, %v863_v19  ;;  %872 = vrcp.f32 %v618_v18 }
 0x1b1   : > { %v865_v20 = vpop.eup %864 }
 0x1b2   : > { %v867_v21 = vpop.eup %866  ;;  %649 = vst.msk [vmem:[%s1056_s16 + $0x60] sm:$0xff] %vm636_vm2, %v865_v20 }
 0x1b3   : > { %644 = vst.msk [vmem:[%s1056_s16 + $0x38] sm:$0xff] %vm636_vm2, %v867_v21 }
 0x1b4   : > { %v869_v23 = vpop.eup %868 }
 0x1b5   : > { %643 = vst.msk [vmem:[%s1056_s16 + $0x30] sm:$0xff] %vm636_vm2, %v869_v23 }
 0x1b8   : > { %v871_v24 = vpop.eup %870 }
 0x1b9   : > { %v873_v25 = vpop.eup %872  ;;  %652 = vst.msk [vmem:[%s1056_s16 + $0x78] sm:$0xff] %vm636_vm2, %v871_v24 }
 0x1ba   : > { %651 = vst.msk [vmem:[%s1056_s16 + $0x70] sm:$0xff] %vm636_vm2, %v873_v25 }
 0x1bb PF: > { %s16_s20 = sadd.s32 1, %s880_s20  }
 0x1bc   : > { %p13_p4 = scmp.ge.s32.totalorder %s16_s20, 4  }
 0x1be   :  { %15 = sbr.rel (!%p13_p4) target bundleno = 2 (0x2), region = 70 }

</bundles_post_ra>
